<compile_context>
chip_gen: v7x
topology: tpu7x:2x2x1
jax: 0.10.0
libtpu: 0.0.40
codegen_flags: <defaults>
</compile_context>

<pallas_src>
import functools

import jax
import jax.numpy as jnp
from jax.experimental import pallas as pl
from jax.experimental.pallas import tpu as pltpu


def _round_up(x: int, m: int) -> int:
    return ((x + m - 1) // m) * m


def _cdiv(a: int, b: int) -> int:
    return (a + b - 1) // b


@functools.lru_cache(maxsize=None)
def _select_config():
    """Generation-aware (tm, tn_h, vmem_limit, buffering) selection."""
    kind = ""
    try:
        kind = jax.devices()[0].device_kind.lower()
    except Exception:
        pass
    vmem_bytes = None
    try:
        vmem_bytes = int(pltpu.get_tpu_info().vmem_capacity_bytes)
    except Exception:
        vmem_bytes = None

    is_v5e = any(t in kind for t in ("v5e", "v5 lite", "v5litepod"))
    big_vmem = ((vmem_bytes is not None and vmem_bytes >= 96 * 1024 * 1024)
                or any(t in kind for t in ("v3", "v4", "v5", "v6")))

    if big_vmem:
        if is_v5e:
            # v5e: already near its ~240 FLOP/byte roofline at tm=256; hide
            # weight-DMA jitter with a 3rd buffer instead of growing tm.
            return dict(tm_max=256, tn_h_target=512, vmem_limit=96 << 20,
                        weight_buffers=3, min_row_blocks=1)
        # v6e class (128 MiB VMEM): large row tile moves the kernel from
        # weight-DMA-bound to MXU-bound; 3-deep weight buffering is free.
        return dict(tm_max=512, tn_h_target=512, vmem_limit=96 << 20,
                    weight_buffers=3, min_row_blocks=1)
    # v7x (64 MiB per-TC VMEM, 2 TensorCores) and unknown chips: conservative
    # VMEM budget, smaller hidden tile so tm=512 fits, and >=2 blocks on the
    # "parallel" row axis so both TensorCores get work.
    return dict(tm_max=512, tn_h_target=256, vmem_limit=48 << 20,
                weight_buffers=2, min_row_blocks=2)


def _pick_hidden_tile(hidden: int, target: int) -> int:
    """Hidden tile size: always a multiple of 128 (<= max(target, 128)).

    The hidden dimension is zero-padded up to a multiple of the returned tile
    in prepare_ffn_weights, so arbitrary `hidden` values are supported.
    """
    target = max(128, _round_up(target, 128))
    if hidden <= target:
        return _round_up(hidden, 128)
    h128 = _round_up(hidden, 128)
    # Prefer a 128-multiple that divides the (128-rounded) hidden: no padding.
    for cand in range(target, 127, -128):
        if h128 % cand == 0:
            return cand
    return target


def _ffn_kernel(x_ref, w13_ref, w2_ref, o_ref, acc_ref, *, tn_h):
    # x_ref:   (tm, in_dim)              resident across the hidden axis
    # w13_ref: (1, in_dim, 2*tn_h)       columns [0:tn_h]=w1 tile, [tn_h:]=w3
    # w2_ref:  (1, tn_h, out_dim)
    # acc_ref: (tm, out_dim) f32 accumulator, resident across the hidden axis
    h_idx = pl.program_id(1)

    @pl.when(h_idx == 0)
    def _():
        acc_ref[...] = jnp.zeros_like(acc_ref)

    x = x_ref[...]
    # Fused gate/up projection: one GEMM with N = 2*tn_h.
    h13 = jnp.dot(x, w13_ref[0], preferred_element_type=jnp.float32)
    h1 = h13[:, :tn_h]     # lane-aligned split (tn_h is a multiple of 128)
    h3 = h13[:, tn_h:]
    # Gate math in f32 (EUP sigmoid + VPU mul).
    gated = (h1 * jax.nn.sigmoid(h1)) * h3
    # Down-projection, accumulated over hidden tiles in f32.
    acc_ref[...] += jnp.dot(gated.astype(w2_ref.dtype), w2_ref[0],
                            preferred_element_type=jnp.float32)

    @pl.when(h_idx == pl.num_programs(1) - 1)
    def _():
        o_ref[...] = acc_ref[...].astype(o_ref.dtype)


def prepare_ffn_weights(w13_weight, w2_weight, *, tn_h=None, dtype=None):
    """One-time weight preprocessing (NOT part of the per-call hot path).

    Args:
      w13_weight: [2*hidden, in_dim]  (PyTorch nn.Linear layout, w1 then w3)
      w2_weight:  [out_dim, hidden]
      tn_h:       hidden tile size (multiple of 128); auto-picked if None
      dtype:      optional compute dtype for the weights (e.g. jnp.bfloat16)
    Returns:
      w13_tiled: (n_h, in_dim, 2*tn_h)  per-hidden-tile [w1_tile | w3_tile]
      w2_tiled:  (n_h, tn_h, out_dim)
    """
    two_hidden, in_dim = w13_weight.shape
    hidden = two_hidden // 2
    out_dim = w2_weight.shape[0]
    if dtype is None:
        dtype = w13_weight.dtype
    if tn_h is None:
        tn_h = _pick_hidden_tile(hidden, _select_config()["tn_h_target"])
    assert tn_h % 128 == 0, "hidden tile must be a multiple of 128"
    hidden_p = _round_up(hidden, tn_h)
    n_h = hidden_p // tn_h

    w1 = jnp.transpose(w13_weight[:hidden]).astype(dtype)    # (in_dim, hidden)
    w3 = jnp.transpose(w13_weight[hidden:]).astype(dtype)    # (in_dim, hidden)
    w2 = jnp.transpose(w2_weight).astype(dtype)              # (hidden, out_dim)
    if hidden_p != hidden:
        pad = hidden_p - hidden
        # silu(0) * 0 == 0 -> zero-padded hidden columns contribute nothing.
        w1 = jnp.pad(w1, ((0, 0), (0, pad)))
        w3 = jnp.pad(w3, ((0, 0), (0, pad)))
        w2 = jnp.pad(w2, ((0, pad), (0, 0)))

    w1 = w1.reshape(in_dim, n_h, tn_h).transpose(1, 0, 2)    # (n_h, in_dim, tn_h)
    w3 = w3.reshape(in_dim, n_h, tn_h).transpose(1, 0, 2)
    w13_tiled = jnp.concatenate([w1, w3], axis=-1)            # (n_h, in_dim, 2*tn_h)
    w2_tiled = w2.reshape(n_h, tn_h, out_dim)                 # (n_h, tn_h, out_dim)
    return w13_tiled, w2_tiled


def feed_forward(x, w13_tiled, w2_tiled, *, tm=None):
    """SwiGLU FFN forward: w2(silu(w1 x) * (w3 x)).

    Args:
      x:          [..., in_dim]
      w13_tiled:  (n_h, in_dim, 2*tn_h)   from prepare_ffn_weights
      w2_tiled:   (n_h, tn_h, out_dim)    from prepare_ffn_weights
      tm:         optional row-tile cap (multiple of 8); auto-picked if None
    Returns:
      [..., out_dim]
    """
    cfg = _select_config()
    n_h, in_dim, two_tn_h = w13_tiled.shape
    tn_h = two_tn_h // 2
    out_dim = w2_tiled.shape[-1]
    hidden_p = n_h * tn_h
    w_dtype = w13_tiled.dtype
    assert w2_tiled.dtype == w_dtype

    *lead, in_dim_x = x.shape
    assert in_dim_x == in_dim
    out_dtype = x.dtype
    x2d = x.reshape(-1, in_dim)
    # bf16 activations x bf16 weights is the native MXU path; mixed dtypes
    # would silently promote to f32 and lose it, so normalize here.
    if x2d.dtype != w_dtype:
        x2d = x2d.astype(w_dtype)
    M = x2d.shape[0]

    itemsize = jnp.dtype(w_dtype).itemsize
    w_buffers = cfg["weight_buffers"] if n_h >= cfg["weight_buffers"] else 2

    # ---- row tile selection -------------------------------------------------
    tm_max = cfg["tm_max"] if tm is None else tm
    tm_max = max(8, _round_up(tm_max, 8))

    def vmem_est(t):  # pipelined block footprint + f32 accumulator
        return (2 * t * in_dim * itemsize
                + w_buffers * in_dim * 2 * tn_h * itemsize
                + w_buffers * tn_h * out_dim * itemsize
                + 2 * t * out_dim * itemsize
                + t * out_dim * 4)

    while tm_max > 8 and vmem_est(tm_max) > int(0.85 * cfg["vmem_limit"]):
        tm_max = max(8, _round_up(tm_max // 2, 8))

    # Minimize padded-tile waste: fewest row tiles of size <= tm_max, rounded
    # up to a sublane multiple (pad per call < 8 rows instead of a full tile).
    n_r = _cdiv(M, tm_max)
    tm_sel = max(8, _round_up(_cdiv(M, n_r), 8))
    m_pad = _round_up(M, tm_sel)
    # v7x has 2 TensorCores: the "parallel" row axis needs >=2 blocks or one
    # core sits idle.
    while m_pad // tm_sel < cfg["min_row_blocks"] and tm_sel > 8:
        tm_sel = max(8, _round_up(tm_sel // 2, 8))
        m_pad = _round_up(M, tm_sel)

    if m_pad != M:
        x2d = jnp.pad(x2d, ((0, m_pad - M), (0, 0)))
    n_row_tiles = m_pad // tm_sel

    # ---- cost estimate (weights are re-streamed once per row tile) ----------
    w_bytes = (w13_tiled.size + w2_tiled.size) * itemsize
    flops = 2 * m_pad * (in_dim * 2 * hidden_p + hidden_p * out_dim)
    bytes_accessed = (m_pad * in_dim * itemsize
                      + n_row_tiles * w_bytes
                      + m_pad * out_dim * jnp.dtype(out_dtype).itemsize)

    def _weight_spec(shape, index_map):
        if w_buffers > 2:
            try:  # deeper weight pipelining on v5e/v6e; fall back cleanly
                return pl.BlockSpec(shape, index_map,
                                    pipeline_mode=pl.Buffered(w_buffers))
            except TypeError:
                pass
        return pl.BlockSpec(shape, index_map)

    kernel = functools.partial(_ffn_kernel, tn_h=tn_h)
    out2d = pl.pallas_call(
        kernel,
        out_shape=jax.ShapeDtypeStruct((m_pad, out_dim), out_dtype),
        grid_spec=pltpu.PrefetchScalarGridSpec(
            num_scalar_prefetch=0,
            grid=(n_row_tiles, n_h),           # (token tiles, hidden tiles)
            in_specs=[
                pl.BlockSpec((tm_sel, in_dim), lambda i, h: (i, 0)),
                _weight_spec((1, in_dim, 2 * tn_h), lambda i, h: (h, 0, 0)),
                _weight_spec((1, tn_h, out_dim), lambda i, h: (h, 0, 0)),
            ],
            out_specs=pl.BlockSpec((tm_sel, out_dim), lambda i, h: (i, 0)),
            scratch_shapes=[pltpu.VMEM((tm_sel, out_dim), jnp.float32)],
        ),
        compiler_params=pltpu.CompilerParams(
            dimension_semantics=("parallel", "arbitrary"),
            vmem_limit_bytes=cfg["vmem_limit"],
        ),
        cost_estimate=pl.CostEstimate(
            flops=flops,
            transcendentals=m_pad * hidden_p,
            bytes_accessed=bytes_accessed,
        ),
    )(x2d, w13_tiled, w2_tiled)

    return out2d[:M].reshape(*lead, out_dim)


def _reference(x, w13_weight, w2_weight):
    hidden = w13_weight.shape[0] // 2
    h = x @ w13_weight.T
    x1, x3 = h[..., :hidden], h[..., hidden:]
    return (jax.nn.silu(x1) * x3) @ w2_weight.T


if __name__ == "__main__":
    batch, seq, in_dim, hidden, out_dim = 2, 8, 32, 64, 32

    key = jax.random.PRNGKey(0)
    kx, k13, k2, kx2 = jax.random.split(key, 4)

    x = jax.random.normal(kx, (batch, seq, in_dim), dtype=jnp.float32)
    # nn.Linear default init is uniform; deterministic normal init is fine here.
    w13_weight = jax.random.normal(k13, (2 * hidden, in_dim), dtype=jnp.float32) * 0.05
    w2_weight = jax.random.normal(k2, (out_dim, hidden), dtype=jnp.float32) * 0.05

    # One-time weight prep (hoisted out of the forward pass; picks a
    # generation-appropriate, 128-aligned hidden tile and pads hidden).
    w13_f32, w2_f32 = prepare_ffn_weights(w13_weight, w2_weight)

    # f32 path, exact check against the pure-JAX reference.
    out = feed_forward(x, w13_f32, w2_f32)
    out = jax.block_until_ready(out)
    ref = _reference(x, w13_weight, w2_weight)
    assert out.shape == (batch, seq, out_dim)
    assert jnp.allclose(out, ref, atol=1e-4, rtol=1e-4)

    # Ragged token count (exercises the minimal-padding path, M=15).
    x_ragged = jax.random.normal(kx2, (3, 5, in_dim), dtype=jnp.float32)
    out_ragged = jax.block_until_ready(feed_forward(x_ragged, w13_f32, w2_f32))
    ref_ragged = _reference(x_ragged, w13_weight, w2_weight)
    assert out_ragged.shape == (3, 5, out_dim)
    assert jnp.allclose(out_ragged, ref_ragged, atol=1e-4, rtol=1e-4)

    # bf16 weight/activation path (production dtype on v6e/v7x); loose check.
    w13_bf16, w2_bf16 = prepare_ffn_weights(w13_weight, w2_weight,
                                            dtype=jnp.bfloat16)
    out_bf16 = feed_forward(x.astype(jnp.bfloat16), w13_bf16, w2_bf16)
    out_bf16 = jax.block_until_ready(out_bf16).astype(jnp.float32)
    assert out_bf16.shape == (batch, seq, out_dim)
    assert bool(jnp.all(jnp.isfinite(out_bf16)))
    assert float(jnp.max(jnp.abs(out_bf16 - ref))) < 0.1

    print("KERNEL_OK")
</pallas_src>

<mosaic_0001>
module attributes {stable_mosaic.version = 11 : i64} {
  func.func @_ffn_kernel(%arg0: i32, %arg1: i32, %arg2: memref<8x32xf32, #tpu.memory_space<vmem>>, %arg3: memref<1x32x256xf32, #tpu.memory_space<vmem>>, %arg4: memref<1x128x32xf32, #tpu.memory_space<vmem>>, %arg5: memref<8x32xf32, #tpu.memory_space<vmem>>, %arg6: memref<8x32xf32, #tpu.memory_space<vmem>>) attributes {dimension_semantics = [#tpu.dimension_semantics<parallel>, #tpu.dimension_semantics<arbitrary>], iteration_bounds = array<i64: 2, 1>, scalar_prefetch = 0 : i64, scratch_operands = 1 : i64, tpu.core_type = #tpu.core_type<tc>, window_params = [{transform_indices = @transform_0, window_bounds = array<i64: 8, 32>}, {transform_indices = @transform_1, window_bounds = array<i64: 1, 32, 256>}, {transform_indices = @transform_2, window_bounds = array<i64: 1, 128, 32>}, {transform_indices = @transform_3, window_bounds = array<i64: 8, 32>}]} {
    %c0_i32 = arith.constant 0 : i32
    %0 = arith.cmpi eq, %arg1, %c0_i32 : i32
    %1 = arith.extui %0 : i1 to i32
    %c0_i32_0 = arith.constant 0 : i32
    %2 = arith.cmpi ne, %1, %c0_i32_0 : i32
    scf.if %2 {
      %cst_16 = arith.constant 0.000000e+00 : f32
      %25 = vector.broadcast %cst_16 : f32 to vector<8x32xf32>
      %c0_17 = arith.constant 0 : index
      %c0_18 = arith.constant 0 : index
      %26 = vector.load %arg6[%c0_17, %c0_18] : memref<8x32xf32, #tpu.memory_space<vmem>>, vector<8x32xf32>
      tpu.vector_store %arg6[%c0_17, %c0_18], %25 {strides = array<i32>} : memref<8x32xf32, #tpu.memory_space<vmem>>, vector<8x32xf32>,
    } else {
    }
    %c0 = arith.constant 0 : index
    %c0_1 = arith.constant 0 : index
    %3 = vector.load %arg2[%c0, %c0_1] : memref<8x32xf32, #tpu.memory_space<vmem>>, vector<8x32xf32>
    %c0_2 = arith.constant 0 : index
    %c0_3 = arith.constant 0 : index
    %c0_4 = arith.constant 0 : index
    %4 = vector.load %arg3[%c0_2, %c0_3, %c0_4] : memref<1x32x256xf32, #tpu.memory_space<vmem>>, vector<1x32x256xf32>
    %5 = vector.shape_cast %4 : vector<1x32x256xf32> to vector<32x256xf32>
    %cst = arith.constant dense<0.000000e+00> : vector<8x256xf32>
    %6 = tpu.matmul %3, %5, %cst {dimension_numbers = #tpu.dot_dimension_numbers<[1], [0], [0], [1], [0, 0, 1, 1], [], []>} : vector<8x32xf32>, vector<32x256xf32>, vector<8x256xf32> -> vector<8x256xf32>
    %7 = vector.extract_strided_slice %6 {offsets = [0, 0], sizes = [8, 128], strides = [1, 1]} : vector<8x256xf32> to vector<8x128xf32>
    %8 = vector.extract_strided_slice %6 {offsets = [0, 128], sizes = [8, 128], strides = [1, 1]} : vector<8x256xf32> to vector<8x128xf32>
    %9 = arith.negf %7 : vector<8x128xf32>
    %10 = math.exp %9 : vector<8x128xf32>
    %cst_5 = arith.constant 1.000000e+00 : f32
    %11 = vector.broadcast %cst_5 : f32 to vector<8x128xf32>
    %12 = arith.addf %11, %10 : vector<8x128xf32>
    %13 = arith.divf %11, %12 : vector<8x128xf32>
    %14 = arith.mulf %7, %13 : vector<8x128xf32>
    %15 = arith.mulf %14, %8 : vector<8x128xf32>
    %c0_6 = arith.constant 0 : index
    %c0_7 = arith.constant 0 : index
    %16 = vector.load %arg6[%c0_6, %c0_7] : memref<8x32xf32, #tpu.memory_space<vmem>>, vector<8x32xf32>
    %c0_8 = arith.constant 0 : index
    %c0_9 = arith.constant 0 : index
    %c0_10 = arith.constant 0 : index
    %17 = vector.load %arg4[%c0_8, %c0_9, %c0_10] : memref<1x128x32xf32, #tpu.memory_space<vmem>>, vector<1x128x32xf32>
    %18 = vector.shape_cast %17 : vector<1x128x32xf32> to vector<128x32xf32>
    %cst_11 = arith.constant dense<0.000000e+00> : vector<8x32xf32>
    %19 = tpu.matmul %15, %18, %cst_11 {dimension_numbers = #tpu.dot_dimension_numbers<[1], [0], [0], [1], [0, 0, 1, 1], [], []>} : vector<8x128xf32>, vector<128x32xf32>, vector<8x32xf32> -> vector<8x32xf32>
    %20 = arith.addf %16, %19 : vector<8x32xf32>
    %c0_12 = arith.constant 0 : index
    %c0_13 = arith.constant 0 : index
    %21 = vector.load %arg6[%c0_12, %c0_13] : memref<8x32xf32, #tpu.memory_space<vmem>>, vector<8x32xf32>
    tpu.vector_store %arg6[%c0_12, %c0_13], %20 {strides = array<i32>} : memref<8x32xf32, #tpu.memory_space<vmem>>, vector<8x32xf32>,
    %c0_i32_14 = arith.constant 0 : i32
    %22 = arith.cmpi eq, %arg1, %c0_i32_14 : i32
    %23 = arith.extui %22 : i1 to i32
    %c0_i32_15 = arith.constant 0 : i32
    %24 = arith.cmpi ne, %23, %c0_i32_15 : i32
    scf.if %24 {
      %c0_16 = arith.constant 0 : index
      %c0_17 = arith.constant 0 : index
      %25 = vector.load %arg6[%c0_16, %c0_17] : memref<8x32xf32, #tpu.memory_space<vmem>>, vector<8x32xf32>
      %c0_18 = arith.constant 0 : index
      %c0_19 = arith.constant 0 : index
      %26 = vector.load %arg5[%c0_18, %c0_19] : memref<8x32xf32, #tpu.memory_space<vmem>>, vector<8x32xf32>
      tpu.vector_store %arg5[%c0_18, %c0_19], %25 {strides = array<i32>} : memref<8x32xf32, #tpu.memory_space<vmem>>, vector<8x32xf32>,
    } else {
    }
    return
  }
  func.func @transform_0(%arg0: i32, %arg1: i32) -> (i32, i32) {
    %c0_i32 = arith.constant 0 : i32
    %c0_i32_0 = arith.constant 0 : i32
    return %arg0, %c0_i32 : i32, i32
  }
  func.func @transform_1(%arg0: i32, %arg1: i32) -> (i32, i32, i32) {
    %c0_i32 = arith.constant 0 : i32
    %c0_i32_0 = arith.constant 0 : i32
    %c0_i32_1 = arith.constant 0 : i32
    return %arg1, %c0_i32, %c0_i32_0 : i32, i32, i32
  }
  func.func @transform_2(%arg0: i32, %arg1: i32) -> (i32, i32, i32) {
    %c0_i32 = arith.constant 0 : i32
    %c0_i32_0 = arith.constant 0 : i32
    %c0_i32_1 = arith.constant 0 : i32
    return %arg1, %c0_i32, %c0_i32_0 : i32, i32, i32
  }
  func.func @transform_3(%arg0: i32, %arg1: i32) -> (i32, i32) {
    %c0_i32 = arith.constant 0 : i32
    %c0_i32_0 = arith.constant 0 : i32
    return %arg0, %c0_i32 : i32, i32
  }
}

</mosaic_0001>

<bundles_post_ra>
// kernel: tpu_custom_call.1
= control target key start
LH: loop header
LB: loop body
LE: loop exit
PB: predicated region body
PF: predicated region fallthrough
CT: control target
= control target key end

     0   :  { %8 = vsyncpa [#allocation4], 0  ;;  %s974_s0 = inlined_call_operand.vmem [shape: f32[16,32], index: 0, kind: input, shape index: {}]   ;;  %s975_s1 = inlined_call_operand.vmem [shape: f32[1,32,256], index: 1, kind: input, shape index: {}]   ;;  %s976_s2 = inlined_call_operand.vmem [shape: f32[1,128,32], index: 2, kind: input, shape index: {}]   ;;  %s977_s3 = inlined_call_operand.hbm [shape: f32[16,32], index: 3, kind: output, shape index: {}]  }
   0x1   :  { %10 = vsyncpa [#allocation4 + $0x1], 0  ;;  %s786_s12 = smov 0   ;;  %s788_s13 = smov 0  }
   0x2   :  { %s790_s14 = smov 0   ;;  %s792_s15 = smov 0  }
   0x3   :  { %s794_s16 = smov 0   ;;  %s796_s17 = smov 0  }
   0x4 LB: > { %s521_s18 = sadd.s32 4294967295, %s760_s17   ;;  %s522_s19 = sadd.s32 4294967294, %s760_s17   ;;  %s760_s17 = sphi %s796_s17, %s16_s17   ;;  %s756_s16 = sphi %s794_s16, %s984_s16   ;;  %s752_s15 = sphi %s792_s15, %s983_s15   ;;  %s748_s14 = sphi %s790_s14, %s982_s14   ;;  %s744_s13 = sphi %s788_s13, %s981_s13   ;;  %s740_s12 = sphi %s786_s12, %s980_s12  }
   0x5   : > { %s28_s20 = sadd.s32 1, %s756_s16  ;;  %s113_s21 = sadd.s32 1, %s748_s14 }
   0x6   : > { %p30_p0 = scmp.ge.s32.totalorder %s28_s20, 2  ;;  %p123_p1 = scmp.ne.s32.totalorder %s748_s14, %s744_s13 }
   0x7   : > { %p124_p2 = scmp.eq.s32.totalorder %s521_s18, 1  ;;  %p129_p3 = scmp.ne.s32.totalorder %s744_s13, %s740_s12 }
   0x8   : > { %s986_s20 = smov (%p30_p0, %s28_s20), 0  ;;  %p130_p5 = scmp.eq.s32.totalorder %s522_s19, 1 }
   0x9   : > { %p826_p4 = por %p124_p2, %p123_p1  ;;  %s110_s23 = ssub.s32 %s756_s16, %s986_s20 }
   0xa   : > { %p527_p6 = scmp.ge.s32.totalorder %s760_s17, 1  ;;  %p111_p7 = scmp.eq.s32.totalorder %s110_s23, 0 }
   0xb   : > { %p833_p8 = por %p130_p5, %p129_p3  ;;  %p171_p9 = scmp.lt.s32.totalorder %s760_s17, 3 }
   0xc   : > { %s839_s25 = scalar_select %p111_p7, %s748_s14, %s113_s21  }
   0xd   : > { %p172_p10 = pnand %p527_p6, %p171_p9 }
   0xe   : > { %v226_v0 = vld [vmem:[%s975_s1 + $0x8] sm:$0xff] (!%p172_p10)  ;;  %v228_v1 = vld [vmem:[%s975_s1 + $0x18] sm:$0xff] (!%p172_p10)  ;;  %v225_v2 = vld [vmem:[%s975_s1] sm:$0xff] (!%p172_p10)  ;;  %p204_p11 = scmp.lt.s32.totalorder (!%p172_p10), %s752_s15, 1  ;;  %vm222_vm0 = vcmask (!%p172_p10), 261120   ;;  %v762_v7 = vmov (!%p172_p10), 0.0  }
   0xf   : > { %175 = sbr.rel (%p172_p10) target bundleno = 505 (0x1f9), region = 32  ;;  %v588_v3 = vpack.c.bf16 (!%p172_p10), %v228_v1, %v226_v0  ;;  %v227_v4 = vld [vmem:[%s975_s1 + $0x10] sm:$0xff] (!%p172_p10)  ;;  %v230_v5 = vld [vmem:[%s975_s1 + $0x28] sm:$0xff] (!%p172_p10)  ;;  %v232_v6 = vld [vmem:[%s975_s1 + $0x38] sm:$0xff] (!%p172_p10)  ;;  %301 = vmatprep.mubr.f32.mxu0 (!%p172_p10), %v762_v7  ;;  %223 = vst.msk [vmem:[#allocation2] sm:$0xff] (!%p172_p10), %vm222_vm0, %v762_v7  ;;  %v763_v12 = vmov (!%p172_p10), 0.0|0.0  }
  0x10   : > { %v590_v8 = vpack.c.bf16 (!%p172_p10), %v227_v4, %v225_v2  ;;  %v592_v9 = vpack.c.bf16 (!%p172_p10), %v232_v6, %v230_v5  ;;  %v229_v10 = vld [vmem:[%s975_s1 + $0x20] sm:$0xff] (!%p172_p10)  ;;  %v231_v11 = vld [vmem:[%s975_s1 + $0x30] sm:$0xff] (!%p172_p10)  ;;  %596 = vmatprep.subr.bf16.mxu1 (!%p172_p10), %v763_v12  ;;  %v318_v16 = vld [vmem:[%s976_s2 + $0x8] sm:$0xff] (!%p172_p10)  ;;  %vm764_vm1 = vmmov (!%p172_p10), 0   ;;  %s201_s28 = sand.u32 (!%p172_p10), 1, %s744_s13   ;;  %s533_s30 = sshll.u32 (!%p172_p10), %s752_s15, 7 }
  0x11   : > { %589 = vmatprep.subr.bf16.mxu0 (!%p172_p10), %v588_v3  ;;  %v594_v13 = vpack.c.bf16 (!%p172_p10), %v231_v11, %v229_v10  ;;  %v317_v15 = vld [vmem:[%s976_s2] sm:$0xff] (!%p172_p10)  ;;  %v319_v18 = vld [vmem:[%s976_s2 + $0x10] sm:$0xff] (!%p172_p10)  ;;  %v320_v19 = vld [vmem:[%s976_s2 + $0x18] sm:$0xff] (!%p172_p10)  ;;  %585 = vmatprep.mubr.msk.f32.mxu1 (!%p172_p10), %vm764_vm1, %v762_v7  ;;  %s926_s8 = scalar_lea.hbm (!%p172_p10), %s977_s3, %s533_s30  ;;  %s411_s9 = scalar_lea.sflag (!%p172_p10), [#allocation4], %s201_s28 }
  0x12   : > { %591 = vmatpush1.bf16.msra.mxu0 (!%p172_p10), %v590_v8  ;;  %v597_v17 = vpack.c.bf16 (!%p172_p10), %v318_v16, %v317_v15  ;;  %v600_v20 = vpack.c.bf16 (!%p172_p10), %v320_v19, %v319_v18  ;;  %v321_v21 = vld [vmem:[%s976_s2 + $0x20] sm:$0xff] (!%p172_p10)  ;;  %v322_v22 = vld [vmem:[%s976_s2 + $0x28] sm:$0xff] (!%p172_p10)  ;;  %v323_v24 = vld [vmem:[%s976_s2 + $0x30] sm:$0xff] (!%p172_p10) }
  0x13   : > { %593 = vmatprep.subr.bf16.mxu0 (!%p172_p10), %v592_v9  ;;  %v603_v23 = vpack.c.bf16 (!%p172_p10), %v322_v22, %v321_v21  ;;  %v324_v25 = vld [vmem:[%s976_s2 + $0x38] sm:$0xff] (!%p172_p10)  ;;  %v325_v27 = vld [vmem:[%s976_s2 + $0x40] sm:$0xff] (!%p172_p10)  ;;  %v326_v28 = vld [vmem:[%s976_s2 + $0x48] sm:$0xff] (!%p172_p10) }
  0x14   : > { %598 = vmatpush3.bf16.msra.mxu1 (!%p172_p10), %v597_v17  ;;  %v606_v26 = vpack.c.bf16 (!%p172_p10), %v324_v25, %v323_v24  ;;  %v609_v29 = vpack.c.bf16 (!%p172_p10), %v326_v28, %v325_v27  ;;  %v327_v30 = vld [vmem:[%s976_s2 + $0x50] sm:$0xff] (!%p172_p10)  ;;  %v328_v31 = vld [vmem:[%s976_s2 + $0x58] sm:$0xff] (!%p172_p10)  ;;  %v329_v33 = vld [vmem:[%s976_s2 + $0x60] sm:$0xff] (!%p172_p10) }
  0x15   : > { %599 = vmatprep.subr.bf16.mxu1 (!%p172_p10), %v763_v12  ;;  %v612_v32 = vpack.c.bf16 (!%p172_p10), %v328_v31, %v327_v30  ;;  %v330_v34 = vld [vmem:[%s976_s2 + $0x68] sm:$0xff] (!%p172_p10)  ;;  %v331_v36 = vld [vmem:[%s976_s2 + $0x70] sm:$0xff] (!%p172_p10)  ;;  %v332_v37 = vld [vmem:[%s976_s2 + $0x78] sm:$0xff] (!%p172_p10) }
  0x16   : > { %s205_s23 = scalar_select %p204_p11, %s752_s15, 1  ;;  %595 = vmatpush1.bf16.msra.mxu0 %v594_v13  ;;  %v615_v35 = vpack.c.bf16 %v330_v34, %v329_v33  ;;  %v618_v38 = vpack.c.bf16 %v332_v37, %v331_v36  ;;  %v316_v47 = vld [vmem:[#allocation2] sm:$0xff] }
  0x17   : > { %s765_s15 = smov [#allocation3]  }
  0x18   : > { %s529_s26 = sshll.u32 %s205_s23, 3  ;;  %601 = vmatpush3.bf16.msra.mxu1 %v600_v20  ;;  %s686_s11 = sshll.u32 %s765_s15, 4  ;;  %s687_s11 = int_to_ptr.vmem [resolvable:$false] %s686_s11 }
  0x19   : > { %s207_s29 = scalar_lea.vmem %s974_s0, %s529_s26  ;;  %602 = vmatprep.subr.bf16.mxu1 %v763_v12  ;;  %s688_s18 = scalar_lea.vmem %s687_s11, 256 }
  0x1a   : > { %v224_v14 = vld [vmem:[%s207_s29] sm:$0xff]  ;;  %s528_s29 = sshll.u32 %s201_s28, 3 }
  0x1b   : > { %530 = vmatmul.mubr.msk.f32.vlgmr.msra.gmra.mrb[0].mxu0 %vm222_vm0, %v224_v14  ;;  %s203_s4 = scalar_lea.vmem [#allocation3], %s528_s29 }
  0x1c   : > { %604 = vmatpush3.bf16.msra.mxu1 %v603_v23  ;;  %s424_s5 = sshll.u32 %s203_s4, 4  ;;  %s928_s5 = int_to_ptr.vmem [resolvable:$true] %s424_s5 }
  0x1d   : > { %605 = vmatprep.subr.bf16.mxu1 %v763_v12  ;;  %s682_s10 = scalar_lea.vmem %s928_s5, 128  ;;  %p689_p1 = scmp.lt.s32.totalorder %s928_s5, %s687_s11 }
  0x1e   : > { %p683_p12 = scmp.ne.s32.totalorder %s928_s5, %s682_s10  ;;  %p690_p2 = scmp.lt.s32.totalorder %s688_s18, %s682_s10 }
  0x20   : > { %607 = vmatpush3.bf16.msra.mxu1 %v606_v26  ;;  %p684_p13 = pnand %p683_p12, %p826_p4  ;;  %p691_p3 = por %p690_p2, %p689_p1 }
  0x21   : > { %608 = vmatprep.subr.bf16.mxu1 %v763_v12 }
  0x22   : > { %p685_p0 = pneg %p684_p13 }
  0x24   : > { %610 = vmatpush3.bf16.msra.mxu1 %v609_v29  ;;  %p692_p5 = pnand %p691_p3, %p685_p0 }
  0x25   : > { %611 = vmatprep.subr.bf16.mxu1 %v763_v12 }
  0x28   : > { %613 = vmatpush3.bf16.msra.mxu1 %v612_v32 }
  0x29   : > { %614 = vmatprep.subr.bf16.mxu1 %v763_v12 }
  0x2c   : > { %616 = vmatpush3.bf16.msra.mxu1 %v615_v35 }
  0x2d   : > { %617 = vmatprep.subr.bf16.mxu1 %v763_v12 }
  0x30   : > { %619 = vmatpush3.bf16.msra.mxu1 %v618_v38 }
  0xee   : > { %v303_v39 = vpop.f32.mrb[0].mxu0 }
  0xef   : > { %v531_v40 = vmul.f32 -1.442695, %v303_v39  ;;  %v305_v41 = vpop.f32.mrb[1].mxu0 }
  0xf1   : > { %678 = vpow2.f32 %v531_v40 }
  0xfb   : > { %v679_v42 = vpop.eup %678 }
  0xfc   : > { %v311_v43 = vadd.f32 1.0, %v679_v42 }
  0xfe   : > { %680 = vrcp.f32 %v311_v43 }
 0x108   : > { %v681_v44 = vpop.eup %680 }
 0x109   : > { %v314_v45 = vmul.f32 %v681_v44, %v303_v39 }
 0x10b   : > { %v315_v46 = vmul.f32 %v314_v45, %v305_v41 }
 0x10d   : > { %586 = vmatmul.mubr.f32.vlgmr.msra.gmra.mrb[0].mxu1 %v315_v46 }
 0x1e0   : > { %v399_v48 = vpop.f32.mrb[0].mxu1 }
 0x1e1   : > { %v403_v49 = vadd.f32 %v399_v48, %v316_v47  ;;  %v587_v50 = vpop.f32.mrb[1].mxu1 }
 0x1e3   : > { %404 = vst.msk [vmem:[#allocation2] sm:$0xff] %vm222_vm0, %v403_v49 }
 0x1ea   : > { %v408_v51 = vld [vmem:[#allocation2] sm:$0xff] }
 0x1eb   : > { %409 = vst.msk [vmem:[%s203_s4] sm:$0xff] %vm222_vm0, %v408_v51 }
 0x1ec   : > { %695 = shalt.err (!%p692_p5)
}
 0x1ed   : > { %s696_s19 = scalar_lea.hbm %s926_s8, 128  ;;  %s700_s26 = scalar_lea.hbm %s977_s3, 256 }
 0x1ee   : > { %p697_p6 = scmp.ne.s32.totalorder %s926_s8, %s696_s19  ;;  %p701_p10 = scmp.lt.u32.totalorder %s926_s8, %s977_s3 }
 0x1ef   : > { %p702_p11 = scmp.lt.u32.totalorder %s700_s26, %s696_s19  ;;  %p704_p13 = scmp.lt.u32.totalorder %s696_s19, %s926_s8 }
 0x1f0   : > { %p698_p7 = pnand %p697_p6, %p826_p4 }
 0x1f1   : > { %p703_p12 = por %p702_p11, %p701_p10 }
 0x1f2   : > { %p699_p9 = pneg %p698_p7 }
 0x1f3   : > { %p705_p0 = por %p704_p13, %p703_p12 }
 0x1f5   : > { %p706_p1 = pnand %p705_p0, %p699_p9 }
 0x1f7   : > { %709 = shalt.err (!%p706_p1)
}
 0x1f8   : > { %620 = dma.vmem_to_hbm [thread:$0]  (%p826_p4), %s928_s5, 128, %s926_s8, %s411_s9  }
 0x1f9 PF: > { %p626_p2 = scmp.ge.s32.totalorder %s760_s17, 2  ;;  %s436_s29 = sand.u32 1, %s740_s12  }
 0x1fa   : > { %s437_s30 = scalar_lea.sflag [#allocation4], %s436_s29 }
 0x1fb   : > { %p623_p3 = pnand %p626_p2, %p833_p8 }
 0x1fd   : > { %735 = dma.done.wait (!%p623_p3), %s437_s30, 128  }
 0x1fe   : > { %737 = vsyncadd (!%p623_p3), %s437_s30, 4294967168  ;;  %s16_s17 = sadd.s32 1, %s760_s17   ;;  %s980_s12 = smov %s744_s13 }
 0x1ff   : > { %p13_p5 = scmp.ge.s32.totalorder %s16_s17, 4   ;;  %s981_s13 = smov %s748_s14 }
 0x200   : > { %s982_s14 = smov %s839_s25  ;;  %s983_s15 = smov %s756_s16 }
 0x201   : > { %s984_s16 = smov %s986_s20  ;;  %15 = sbr.rel (!%p13_p5) target bundleno = 4 (0x4), region = 81 }
 0x208   :  { %442 = vsyncpa [#allocation4], 1 }
 0x209   :  { %444 = vsyncpa [#allocation4 + $0x1], 1 }

</bundles_post_ra>
